<compile_context>
chip_gen: v7x
topology: tpu7x:2x2x1
jax: 0.10.0
libtpu: 0.0.40
codegen_flags: <defaults>
</compile_context>

<pallas_src>
import functools

import jax
import jax.numpy as jnp
from jax import lax
from jax.experimental import pallas as pl
from jax.experimental.pallas import tpu as pltpu

REG_LAYER = 1
CLS_LAYER = 0
REG_LAMBDA = 1.0
CLS_LAMBDA = 0.5

_LANE = 128
_SUB = 8
_TARGET_ROWS = 4096            # 512 (8,128) slabs = 2 MiB per f32 stream / step
_VMEM_LIMIT = 40 * 1024 * 1024  # fits v7x's 64 MiB physical VMEM with headroom
_SMALL_N_DEFAULT = 1 << 15      # below this, plain XLA fusion wins


def _reference(preds, labels, reg_layer, cls_layer, reg_lambda, cls_lambda):
    """Plain-JAX forward (MSE + stable BCE-with-logits). Also the small-n path."""
    reg_p = preds[:, reg_layer].astype(jnp.float32)
    cls_p = preds[:, cls_layer].astype(jnp.float32)
    reg_l = labels[..., reg_layer].astype(jnp.float32)
    cls_l = labels[..., cls_layer].astype(jnp.float32)
    reg_loss = jnp.mean((cls_p * reg_p - reg_l) ** 2)
    cls_loss = jnp.mean(jnp.maximum(cls_p, 0.0) - cls_p * cls_l
                        + jnp.log1p(jnp.exp(-jnp.abs(cls_p))))
    return reg_lambda * reg_loss + cls_lambda * cls_loss


def _pick_tiling(R, B):
    """Rows-per-tile (multiple of 8, <= R), inner chunk rows, #tiles."""
    tr = min(_TARGET_ROWS, (R // _SUB) * _SUB)
    if B == 1 and R >= 2 * _SUB:
        # Ensure >= 2 grid tiles so both v7x TensorCores get work.
        half = ((-(-R // 2)) + _SUB - 1) // _SUB * _SUB
        tr = min(tr, max(_SUB, half))
    if tr >= 64:
        tr = (tr // 64) * 64
        chunk = 64
    else:
        chunk = tr
    T = -(-R // tr)
    return tr, chunk, T


def _loss_kernel(cls_p_ref, reg_p_ref, lab_ref, out_ref, *,
                 tr, chunk, hw, reg_lambda, cls_lambda):
    """One grid step == one (tr, 128) tile of one batch's flattened H*W stream.

    cls_p_ref / reg_p_ref : (tr, 128)     selected pred channels
    lab_ref               : (2, tr, 128)  packed (cls, reg) label channels
    out_ref               : (8, 128)      weighted partial sums for this tile
    """
    t = pl.program_id(1)
    row0 = t * tr
    nslabs = chunk // _SUB

    def body(i, acc):
        r0 = pl.multiple_of(i * chunk, chunk)
        cp = cls_p_ref[pl.ds(r0, chunk), :].astype(jnp.float32)
        rp = reg_p_ref[pl.ds(r0, chunk), :].astype(jnp.float32)
        lab = lab_ref[:, pl.ds(r0, chunk), :].astype(jnp.float32)
        cl = lab[0]
        rl = lab[1]

        # Regression branch: squared error of (cls_preds * reg_preds) vs reg_labels.
        diff = cp * rp - rl
        sq = diff * diff
        # Classification branch: stable BCE-with-logits (exp/log1p hit the EUP slot).
        bce = (jnp.maximum(cp, 0.0) - cp * cl
               + jnp.log1p(jnp.exp(-jnp.abs(cp))))

        # Element-index mask: exact for zero-padded tails AND for OOB garbage in
        # partial boundary blocks (dtype-safe, replaces the old -1e30 sentinel).
        rows = row0 + r0 + lax.broadcasted_iota(jnp.int32, (chunk, _LANE), 0)
        lanes = lax.broadcasted_iota(jnp.int32, (chunk, _LANE), 1)
        valid = rows * _LANE + lanes < hw
        contrib = jnp.where(valid, reg_lambda * sq + cls_lambda * bce, 0.0)

        # Chunk -> (8,128): static, sublane-aligned slices; pure VPU adds.
        for s in range(nslabs):
            acc = acc + contrib[s * _SUB:(s + 1) * _SUB, :]
        return acc

    acc = lax.fori_loop(0, tr // chunk, body,
                        jnp.zeros((_SUB, _LANE), jnp.float32))
    out_ref[...] = acc


@functools.partial(jax.jit, static_argnames=("reg_layer", "cls_layer",
                                             "reg_lambda", "cls_lambda",
                                             "min_kernel_elems"))
def targetted_regression_classification(preds, labels, *,
                                         reg_layer=REG_LAYER,
                                         cls_layer=CLS_LAYER,
                                         reg_lambda=REG_LAMBDA,
                                         cls_lambda=CLS_LAMBDA,
                                         min_kernel_elems=_SMALL_N_DEFAULT):
    B, C, H, W = preds.shape
    assert labels.shape == (B, H, W, C), (labels.shape, (B, H, W, C))
    HW = H * W
    n = B * HW

    # Small-n fast path: kernel launch + prep dominate; XLA fusion is faster.
    if n < min_kernel_elems:
        return _reference(preds, labels, reg_layer, cls_layer,
                          float(reg_lambda), float(cls_lambda))

    R_raw = -(-HW // _LANE)
    direct = (HW % _LANE == 0) and (R_raw >= _SUB)

    # ---- preds: zero-copy channel selection when lane-aligned ---------------
    if direct:
        R = R_raw
        preds_src = preds.reshape(B, C, R, _LANE)        # free reshape (NCHW)
        cls_idx, reg_idx = cls_layer, reg_layer
    else:
        # Fallback (HW not a multiple of 128, or tiny): copy only the 2 used
        # channels, zero-pad the element axis up to a multiple of 8*128.
        R = max(_SUB, ((R_raw + _SUB - 1) // _SUB) * _SUB)
        pad = R * _LANE - HW
        p2 = preds.reshape(B, C, HW)
        p2 = jnp.stack([p2[:, cls_layer], p2[:, reg_layer]], axis=1)  # (B,2,HW)
        if pad:
            p2 = jnp.pad(p2, ((0, 0), (0, 0), (0, pad)))
        preds_src = p2.reshape(B, 2, R, _LANE)
        cls_idx, reg_idx = 0, 1

    # ---- labels: single-pass channel gather from NHWC -----------------------
    pad = R * _LANE - HW
    lab = labels.reshape(B, HW, C)
    lab = jnp.take(lab, jnp.asarray([cls_layer, reg_layer]), axis=2)  # (B,HW,2)
    lab = jnp.transpose(lab, (0, 2, 1))                               # (B,2,HW)
    if pad:
        lab = jnp.pad(lab, ((0, 0), (0, 0), (0, pad)))
    lab_src = lab.reshape(B, 2, R, _LANE)

    # ---- tiling / grid -------------------------------------------------------
    TR, CHUNK, T = _pick_tiling(R, B)

    kernel = functools.partial(_loss_kernel, tr=TR, chunk=CHUNK, hw=HW,
                               reg_lambda=float(reg_lambda),
                               cls_lambda=float(cls_lambda))

    cls_spec = pl.BlockSpec((None, None, TR, _LANE),
                            lambda b, t, _c=cls_idx: (b, _c, t, 0))
    reg_spec = pl.BlockSpec((None, None, TR, _LANE),
                            lambda b, t, _c=reg_idx: (b, _c, t, 0))
    lab_spec = pl.BlockSpec((None, 2, TR, _LANE), lambda b, t: (b, 0, t, 0))
    out_spec = pl.BlockSpec((None, None, _SUB, _LANE), lambda b, t: (b, t, 0, 0))

    partials = pl.pallas_call(
        kernel,
        out_shape=jax.ShapeDtypeStruct((B, T, _SUB, _LANE), jnp.float32),
        grid=(B, T),
        in_specs=[cls_spec, reg_spec, lab_spec],
        out_specs=out_spec,
        compiler_params=pltpu.CompilerParams(
            dimension_semantics=("parallel", "parallel"),
            vmem_limit_bytes=_VMEM_LIMIT),
    )(preds_src, preds_src, lab_src)

    # Both losses are means over the same n elements, so one scale is exact.
    return jnp.sum(partials) * (1.0 / float(n))


if __name__ == "__main__":
    key = jax.random.PRNGKey(0)

    def run_case(B, C, H, W, tag):
        k1, k2 = jax.random.split(jax.random.fold_in(key, H * 1000 + W))
        preds = jax.random.normal(k1, (B, C, H, W), dtype=jnp.float32)     # NCHW
        labels = jax.random.uniform(k2, (B, H, W, C), dtype=jnp.float32)   # NHWC
        out = targetted_regression_classification(preds, labels,
                                                  min_kernel_elems=0)
        out = jax.block_until_ready(out)
        ref = _reference(preds, labels, REG_LAYER, CLS_LAYER,
                         REG_LAMBDA, CLS_LAMBDA)
        assert jnp.allclose(out, ref, rtol=1e-5, atol=1e-5), (tag, out, ref)

    run_case(2, 4, 32, 32, "direct")     # zero-copy preds path (HW % 128 == 0)
    run_case(2, 4, 16, 16, "fallback")   # padded + masked fallback path
    run_case(2, 4, 128, 128, "chunked")  # multi-chunk in-kernel accumulation
    print("KERNEL_OK")
</pallas_src>

<mosaic_0001>
module attributes {stable_mosaic.version = 11 : i64} {
  func.func @_loss_kernel(%arg0: i32, %arg1: i32, %arg2: memref<1x1x8x128xf32, #tpu.memory_space<vmem>>, %arg3: memref<1x1x8x128xf32, #tpu.memory_space<vmem>>, %arg4: memref<1x2x8x128xf32, #tpu.memory_space<vmem>>, %arg5: memref<1x1x8x128xf32, #tpu.memory_space<vmem>>) attributes {dimension_semantics = [#tpu.dimension_semantics<parallel>, #tpu.dimension_semantics<parallel>], iteration_bounds = array<i64: 2, 1>, scalar_prefetch = 0 : i64, scratch_operands = 0 : i64, tpu.core_type = #tpu.core_type<tc>, window_params = [{transform_indices = @transform_0, window_bounds = array<i64: 1, 1, 8, 128>}, {transform_indices = @transform_1, window_bounds = array<i64: 1, 1, 8, 128>}, {transform_indices = @transform_2, window_bounds = array<i64: 1, 2, 8, 128>}, {transform_indices = @transform_3, window_bounds = array<i64: 1, 1, 8, 128>}]} {
    %c8_i32 = arith.constant 8 : i32
    %0 = arith.muli %arg1, %c8_i32 : i32
    %cst = arith.constant 0.000000e+00 : f32
    %1 = vector.broadcast %cst : f32 to vector<8x128xf32>
    %c0_i32 = arith.constant 0 : i32
    %c8_i32_0 = arith.constant 8 : i32
    %2 = arith.muli %c0_i32, %c8_i32_0 : i32
    %3 = tpu.assume_multiple %2, 8 : i32
    %c0 = arith.constant 0 : index
    %c0_1 = arith.constant 0 : index
    %4 = arith.index_cast %3 : i32 to index
    %c0_2 = arith.constant 0 : index
    %5 = vector.load %arg2[%c0, %c0_1, %4, %c0_2] : memref<1x1x8x128xf32, #tpu.memory_space<vmem>>, vector<1x1x8x128xf32>
    %6 = vector.shape_cast %5 : vector<1x1x8x128xf32> to vector<8x128xf32>
    %c0_3 = arith.constant 0 : index
    %c0_4 = arith.constant 0 : index
    %7 = arith.index_cast %3 : i32 to index
    %c0_5 = arith.constant 0 : index
    %8 = vector.load %arg3[%c0_3, %c0_4, %7, %c0_5] : memref<1x1x8x128xf32, #tpu.memory_space<vmem>>, vector<1x1x8x128xf32>
    %9 = vector.shape_cast %8 : vector<1x1x8x128xf32> to vector<8x128xf32>
    %c0_6 = arith.constant 0 : index
    %c0_7 = arith.constant 0 : index
    %10 = arith.index_cast %3 : i32 to index
    %c0_8 = arith.constant 0 : index
    %11 = vector.load %arg4[%c0_6, %c0_7, %10, %c0_8] : memref<1x2x8x128xf32, #tpu.memory_space<vmem>>, vector<1x2x8x128xf32>
    %12 = vector.shape_cast %11 : vector<1x2x8x128xf32> to vector<2x8x128xf32>
    %13 = vector.extract_strided_slice %12 {offsets = [0, 0, 0], sizes = [1, 8, 128], strides = [1, 1, 1]} : vector<2x8x128xf32> to vector<1x8x128xf32>
    %14 = vector.shape_cast %13 : vector<1x8x128xf32> to vector<8x128xf32>
    %15 = vector.extract_strided_slice %12 {offsets = [1, 0, 0], sizes = [1, 8, 128], strides = [1, 1, 1]} : vector<2x8x128xf32> to vector<1x8x128xf32>
    %16 = vector.shape_cast %15 : vector<1x8x128xf32> to vector<8x128xf32>
    %17 = arith.mulf %6, %9 : vector<8x128xf32>
    %18 = arith.subf %17, %16 : vector<8x128xf32>
    %19 = arith.mulf %18, %18 : vector<8x128xf32>
    %cst_9 = arith.constant 0.000000e+00 : f32
    %20 = vector.broadcast %cst_9 : f32 to vector<8x128xf32>
    %21 = arith.maximumf %6, %20 : vector<8x128xf32>
    %22 = arith.mulf %6, %14 : vector<8x128xf32>
    %23 = arith.subf %21, %22 : vector<8x128xf32>
    %24 = math.absf %6 : vector<8x128xf32>
    %cst_10 = arith.constant 0.000000e+00 : f32
    %25 = vector.broadcast %cst_10 : f32 to vector<8x128xf32>
    %26 = arith.subf %25, %24 : vector<8x128xf32>
    %27 = math.exp %26 : vector<8x128xf32>
    %28 = math.log1p %27 : vector<8x128xf32>
    %29 = arith.addf %23, %28 : vector<8x128xf32>
    %30 = arith.addi %0, %3 : i32
    %31 = tpu.iota {dimensions = array<i32: 0>} : vector<8x128xi32>
    %32 = vector.broadcast %30 : i32 to vector<8x128xi32>
    %33 = arith.addi %32, %31 : vector<8x128xi32>
    %34 = tpu.iota {dimensions = array<i32: 1>} : vector<8x128xi32>
    %c128_i32 = arith.constant 128 : i32
    %35 = vector.broadcast %c128_i32 : i32 to vector<8x128xi32>
    %36 = arith.muli %33, %35 : vector<8x128xi32>
    %37 = arith.addi %36, %34 : vector<8x128xi32>
    %c1024_i32 = arith.constant 1024 : i32
    %38 = vector.broadcast %c1024_i32 : i32 to vector<8x128xi32>
    %39 = arith.cmpi slt, %37, %38 : vector<8x128xi32>
    %cst_11 = arith.constant 1.000000e+00 : f32
    %40 = vector.broadcast %cst_11 : f32 to vector<8x128xf32>
    %41 = arith.mulf %40, %19 : vector<8x128xf32>
    %cst_12 = arith.constant 5.000000e-01 : f32
    %42 = vector.broadcast %cst_12 : f32 to vector<8x128xf32>
    %43 = arith.mulf %42, %29 : vector<8x128xf32>
    %44 = arith.addf %41, %43 : vector<8x128xf32>
    %cst_13 = arith.constant 0.000000e+00 : f32
    %45 = vector.broadcast %cst_13 : f32 to vector<8x128xf32>
    %46 = arith.select %39, %44, %45 : vector<8x128xi1>, vector<8x128xf32>
    %47 = arith.addf %1, %46 : vector<8x128xf32>
    %c1_i32 = arith.constant 1 : i32
    %c0_14 = arith.constant 0 : index
    %c0_15 = arith.constant 0 : index
    %c0_16 = arith.constant 0 : index
    %c0_17 = arith.constant 0 : index
    %48 = vector.load %arg5[%c0_14, %c0_15, %c0_16, %c0_17] : memref<1x1x8x128xf32, #tpu.memory_space<vmem>>, vector<1x1x8x128xf32>
    %49 = vector.shape_cast %48 : vector<1x1x8x128xf32> to vector<8x128xf32>
    %50 = vector.shape_cast %47 : vector<8x128xf32> to vector<1x1x8x128xf32>
    tpu.vector_store %arg5[%c0_14, %c0_15, %c0_16, %c0_17], %50 {strides = array<i32>} : memref<1x1x8x128xf32, #tpu.memory_space<vmem>>, vector<1x1x8x128xf32>,
    return
  }
  func.func @transform_0(%arg0: i32, %arg1: i32) -> (i32, i32, i32, i32) {
    %c0_i32 = arith.constant 0 : i32
    %c0_i32_0 = arith.constant 0 : i32
    %c0_i32_1 = arith.constant 0 : i32
    return %arg0, %c0_i32, %arg1, %c0_i32_0 : i32, i32, i32, i32
  }
  func.func @transform_1(%arg0: i32, %arg1: i32) -> (i32, i32, i32, i32) {
    %c1_i32 = arith.constant 1 : i32
    %c0_i32 = arith.constant 0 : i32
    %c0_i32_0 = arith.constant 0 : i32
    return %arg0, %c1_i32, %arg1, %c0_i32 : i32, i32, i32, i32
  }
  func.func @transform_2(%arg0: i32, %arg1: i32) -> (i32, i32, i32, i32) {
    %c0_i32 = arith.constant 0 : i32
    %c0_i32_0 = arith.constant 0 : i32
    %c0_i32_1 = arith.constant 0 : i32
    return %arg0, %c0_i32, %arg1, %c0_i32_0 : i32, i32, i32, i32
  }
  func.func @transform_3(%arg0: i32, %arg1: i32) -> (i32, i32, i32, i32) {
    %c0_i32 = arith.constant 0 : i32
    %c0_i32_0 = arith.constant 0 : i32
    %c0_i32_1 = arith.constant 0 : i32
    return %arg0, %arg1, %c0_i32, %c0_i32_0 : i32, i32, i32, i32
  }
}

</mosaic_0001>

<bundles_post_ra>
// kernel: targetted_regression_classification.1
= control target key start
LH: loop header
LB: loop body
LE: loop exit
PB: predicated region body
PF: predicated region fallthrough
CT: control target
= control target key end

     0   :  { %s511_s12 = smov 0   ;;  %s513_s13 = smov 0   ;;  %s555_s0 = inlined_call_operand.vmem [shape: f32[2,4,8,128], index: 0, kind: input, shape index: {}, may-alias: {0,1}]   ;;  %s556_s1 = inlined_call_operand.vmem [shape: f32[2,4,8,128], index: 1, kind: input, shape index: {}, may-alias: {0,1}]   ;;  %s557_s2 = inlined_call_operand.vmem [shape: f32[2,2,8,128], index: 2, kind: input, shape index: {}]   ;;  %s558_s3 = inlined_call_operand.vmem [shape: f32[2,1,8,128], index: 3, kind: output, shape index: {}]  }
   0x1   :  { %s515_s14 = smov 0  }
   0x2 LB: > { %s25_s15 = sadd.s32 1, %s485_s13  ;;  %p425_p0 = scmp.ge.s32.totalorder %s489_s14, 1  ;;  %s489_s14 = sphi %s515_s14, %s13_s14   ;;  %s485_s13 = sphi %s513_s13, %s560_s13   ;;  %s481_s12 = sphi %s511_s12, %s559_s12  }
   0x3   : > { %p27_p1 = scmp.ge.s32.totalorder %s25_s15, 2  ;;  %p187_p2 = scmp.lt.s32.totalorder %s489_s14, 3 }
   0x5   : > { %s562_s15 = smov (%p27_p1, %s25_s15), 0  ;;  %p188_p3 = pnand %p425_p0, %p187_p2 }
   0x6   : > { %p233_p4 = scmp.lt.s32.totalorder (!%p188_p3), %s481_s12, 1  ;;  %v291_v7 = vlaneseq (!%p188_p3) }
   0x7   : > { %191 = sbr.rel (%p188_p3) target bundleno = 59 (0x3b), region = 32 }
   0x8   : > { %v292_v11 = vshrl.u32 (!%p188_p3), %v291_v7, 7  ;;  %v296_v18 = vand.u32 (!%p188_p3), 127, %v291_v7 }
   0xa   : > { %v297_v19 = vmul.u32 (!%p188_p3), 128, %v292_v11 }
   0xc   : > { %v298_v25 = vadd.s32 (!%p188_p3), %v297_v19, %v296_v18 }
   0xe   : > { %s564_s12 = smov (!%p233_p4, %s481_s12), 1  ;;  %vm299_vm1 = vcmp.lt.s32.totalorder %v298_v25, 1024 }
   0xf   : > { %s436_s16 = sshll.u32 %s564_s12, 5  ;;  %s438_s20 = sshll.u32 %s564_s12, 4 }
  0x10   : > { %s240_s19 = scalar_lea.vmem %s555_s0, %s436_s16  ;;  %s366_s23 = scalar_lea.vmem %s556_s1, %s436_s16 }
  0x11   : > { %v266_v0 = vld [vmem:[%s240_s19] sm:$0xff]  ;;  %s257_s26 = scalar_lea.vmem %s557_s2, %s438_s20  ;;  %v433_v8 = vld [vmem:[%s366_s23 + $0x8] sm:$0xff]  ;;  %s432_s27 = sshll.u32 %s564_s12, 3 }
  0x12   : > { %v276_v1 = vand.u32 2147483647, %v266_v0  ;;  %v268_v9 = vld [vmem:[%s257_s26] sm:$0xff]  ;;  %v270_v12 = vmul.f32 %v433_v8, %v266_v0  ;;  %v273_v13 = vmax.f32 %v266_v0, 0.0  ;;  %v269_v16 = vld [vmem:[%s257_s26 + $0x8] sm:$0xff]  ;;  %s264_s30 = scalar_lea.vmem %s558_s3, %s432_s27 }
  0x13   : > { %v274_v14 = vmul.f32 %v268_v9, %v266_v0 }
  0x14   : > { %v277_v2 = vsub.f32 0.0, %v276_v1  ;;  %v271_v21 = vsub.f32 %v270_v12, %v269_v16 }
  0x15   : > { %v275_v22 = vsub.f32 %v273_v13, %v274_v14 }
  0x16   : > { %v278_v3 = vmul.f32 1.442695, %v277_v2  ;;  %v272_v26 = vmul.f32 %v271_v21, %v271_v21 }
  0x18   : > { %463 = vpow2.f32 %v278_v3 }
  0x22   : > { %v464_v4 = vpop.eup %463 }
  0x23   : > { %v280_v5 = vadd.f32 1.0, %v464_v4  ;;  %v283_v6 = vmul.f32 -0.5, %v464_v4  ;;  %v286_v15 = vand.u32 2147483647, %v464_v4 }
  0x25   : > { %465 = vlog2.f32 %v280_v5  ;;  %v284_v10 = vadd.f32 1.0, %v283_v6  ;;  %vm287_vm0 = vcmp.lt.f32.partialorder %v286_v15, 0.0004427343 }
  0x27   : > { %v285_v17 = vmul.f32 %v464_v4, %v284_v10 }
  0x2f   : > { %v466_v20 = vpop.eup %465 }
  0x30   : > { %v282_v23 = vmul.f32 0.6931472, %v466_v20 }
  0x32   : > { %v288_v24 = vsel %vm287_vm0, %v285_v17, %v282_v23 }
  0x33   : > { %v289_v27 = vadd.f32 %v288_v24, %v275_v22 }
  0x35   : > { %v300_v28 = vmul.f32 0.5, %v289_v27 }
  0x37   : > { %v301_v29 = vadd.f32 %v300_v28, %v272_v26 }
  0x39   : > { %v302_v30 = vsel %vm299_vm1, %v301_v29, 0.0 }
  0x3a   : > { %304 = vst [vmem:[%s264_s30] sm:$0xff] %v302_v30 }
  0x3b PF: > { %s13_s14 = sadd.s32 1, %s489_s14   ;;  %s559_s12 = smov %s485_s13 }
  0x3c   : > { %p10_p5 = scmp.ge.s32.totalorder %s13_s14, 4   ;;  %s560_s13 = smov %s562_s15 }
  0x3e   :  { %12 = sbr.rel (!%p10_p5) target bundleno = 2 (0x2), region = 68 }

</bundles_post_ra>
